<compile_context>
chip_gen: v6e
topology: v6e:2x2x1
jax: 0.10.0
libtpu: 0.0.40
codegen_flags: <defaults>
</compile_context>

<pallas_src>
import functools

import jax
import jax.numpy as jnp
from jax.experimental import pallas as pl
from jax.experimental.pallas import tpu as pltpu

_LANES = 128


def _hw_config():
    """Return (num_tensorcores_to_use, max_block_rows) for the local TPU."""
    kind = ""
    try:
        kind = jax.devices()[0].device_kind.lower()
    except Exception:  # defensive: fall back to the safe single-core config
        pass
    if "v7" in kind or "7x" in kind:
        # 2 TensorCores per chip; 3.2 TB/s HBM -> bigger blocks to amortize
        # the ~0.35us per-grid-step overhead.  (4096, 128) f32 blocks = 2 MiB;
        # 2 inputs x 2 pipeline buffers = 8 MiB VMEM, well under limits.
        return 2, 4096
    # v5e / v6e: single TensorCore; (1024, 128) f32 blocks already reach ~86%
    # of the HBM roofline and need only 2 x 2 x 512 KiB = 2 MiB VMEM.
    return 1, 1024


def _elem_pow(v, p):
    """Elementwise v**p for v >= 0 with static p > 0.

    Integer p lowers to plain VPU multiplies (exponentiation by squaring);
    p == 1 is the identity (no extra ops).  Non-integer p uses a
    log(0)-guarded exp/log fallback on the EUP.
    """
    if float(p) == int(p) and int(p) >= 1:
        e = int(p)
        result = None
        base = v
        while e:
            if e & 1:
                result = base if result is None else result * base
            e >>= 1
            if e:
                base = base * base
        return result
    safe = jnp.where(v > 0, v, 1.0)
    return jnp.where(v > 0, jnp.exp(float(p) * jnp.log(safe)), 0.0)


def _soft_dice_partials_kernel(x_ref, y_ref, max_ref, s1_ref, s2_ref, s3_ref, *, p):
    """Fold one (block_rows, 128) tile of logits/labels into four
    output-resident (8, 128) partials: max(relu), sum(relu*y), sum(relu**p),
    sum(y**p)."""
    # Initialize accumulators on the first step of the reduction axis (axis 1).
    # relu >= 0, so 0 is a valid identity for the max accumulator.
    @pl.when(pl.program_id(1) == 0)
    def _():
        max_ref[...] = jnp.zeros_like(max_ref)
        s1_ref[...] = jnp.zeros_like(s1_ref)
        s2_ref[...] = jnp.zeros_like(s2_ref)
        s3_ref[...] = jnp.zeros_like(s3_ref)

    x = x_ref[...].astype(jnp.float32)
    y = y_ref[...].astype(jnp.float32)
    r = jnp.maximum(x, 0.0)                       # relu(logits)

    # (block_rows, 128) -> (8, 128) partial reductions; regroups whole (8,128)
    # sublane tiles, so this is pure VPU work (no cross-lane movement).
    def _rsum(v):
        return jnp.sum(v.reshape(-1, 8, _LANES), axis=0)

    def _rmax(v):
        return jnp.max(v.reshape(-1, 8, _LANES), axis=0)

    max_ref[...] = jnp.maximum(max_ref[...], _rmax(r))
    s1_ref[...] += _rsum(r * y)
    # _elem_pow(v, 1) is the identity, so p == 1 adds no extra VPU work.
    s2_ref[...] += _rsum(_elem_pow(r, p))
    s3_ref[...] += _rsum(_elem_pow(y, p))


def _jax_partials(x, y, p):
    """Plain-JAX partials for the (small) ragged tail."""
    xf = x.astype(jnp.float32)
    yf = y.astype(jnp.float32)
    r = jnp.maximum(xf, 0.0)
    return (jnp.max(r), jnp.sum(r * yf),
            jnp.sum(_elem_pow(r, p)), jnp.sum(_elem_pow(yf, p)))


def soft_dice_loss(logits, labels, *, p=1, smooth=1):
    assert logits.shape == labels.shape
    assert logits.size > 0
    assert p > 0, "zero identities (tail / lane pad) require p > 0 (default p=1)"

    x = logits.reshape(-1)
    y = labels.reshape(-1)
    n = x.size

    rem = n % _LANES
    if rem:
        # TODO(synk): a sub-128 remainder still costs one pad copy of the
        # inputs; the padded zeros are exact identities for all four partials
        # (p > 0, relu >= 0).
        x = jnp.pad(x, (0, _LANES - rem))
        y = jnp.pad(y, (0, _LANES - rem))
    total_rows = x.size // _LANES
    x2 = x.reshape(total_rows, _LANES)
    y2 = y.reshape(total_rows, _LANES)

    num_cores, max_rows = _hw_config()

    # Packed-sublane row granularity of the input dtypes
    # (8 rows for 32-bit, 16 for bf16, 32 for 8-bit).
    row_mult = max(
        8 * max(1, 4 // jnp.dtype(logits.dtype).itemsize),
        8 * max(1, 4 // jnp.dtype(labels.dtype).itemsize))

    # Largest block (multiple of row_mult, capped at max_rows) such that each
    # core sees at least one full block.  The grid only covers the
    # block-aligned prefix of the array; the ragged tail is never DMA'd.
    block_rows = min(max_rows, (total_rows // (num_cores * row_mult)) * row_mult)

    m_parts, s1_parts, s2_parts, s3_parts = [], [], [], []
    aligned_rows = 0

    if block_rows >= row_mult:
        chunk = num_cores * block_rows
        tiles_per_core = total_rows // chunk
        aligned_rows = tiles_per_core * chunk

        in_spec = pl.BlockSpec((block_rows, _LANES),
                               lambda c, i: (c * tiles_per_core + i, 0))
        out_spec = pl.BlockSpec((8, _LANES), lambda c, i: (c, 0))
        out_shape = jax.ShapeDtypeStruct((num_cores * 8, _LANES), jnp.float32)

        if num_cores > 1:
            dim_sem = (getattr(pltpu, "CORE_PARALLEL", "parallel"),
                       getattr(pltpu, "ARBITRARY", "arbitrary"))
        else:
            dim_sem = ("arbitrary", "arbitrary")

        kernel = functools.partial(_soft_dice_partials_kernel, p=p)
        max_p, s1_p, s2_p, s3_p = pl.pallas_call(
            kernel,
            out_shape=(out_shape, out_shape, out_shape, out_shape),
            grid_spec=pltpu.PrefetchScalarGridSpec(
                num_scalar_prefetch=0,
                grid=(num_cores, tiles_per_core),
                in_specs=[in_spec, in_spec],
                out_specs=(out_spec, out_spec, out_spec, out_spec),
            ),
            compiler_params=pltpu.CompilerParams(
                dimension_semantics=dim_sem,
                vmem_limit_bytes=32 * 1024 * 1024,
            ),
        )(x2, y2)

        m_parts.append(jnp.max(max_p))
        s1_parts.append(jnp.sum(s1_p))
        s2_parts.append(jnp.sum(s2_p))
        s3_parts.append(jnp.sum(s3_p))

    tail_rows = total_rows - aligned_rows
    if tail_rows:
        # Ragged tail (< one chunk of rows): small suffix slice reduced by XLA.
        tm, ts1, ts2, ts3 = _jax_partials(x2[aligned_rows:], y2[aligned_rows:], p)
        m_parts.append(tm)
        s1_parts.append(ts1)
        s2_parts.append(ts2)
        s3_parts.append(ts3)

    m = functools.reduce(jnp.maximum, m_parts)
    s1 = sum(s1_parts)
    s2 = sum(s2_parts)
    s3 = sum(s3_parts)

    # Final scalar algebra, including the data-dependent "max(relu) == 0"
    # branch of the reference (preds = relu(x)/m, or relu(x) when m == 0).
    safe_m = jnp.where(m > 0, m, 1.0)
    inv_m = jnp.where(m > 0, 1.0 / safe_m, 1.0)
    numer = s1 * inv_m
    denor = s2 * (inv_m ** p) + s3
    loss = -(2.0 * numer + smooth) / (denor + smooth)
    return loss


def _reference_soft_dice(logits, labels, p=1, smooth=1):
    """Pure-JAX reference mirroring the PyTorch forward."""
    r = jnp.maximum(logits.astype(jnp.float32), 0.0)
    m = jnp.max(r)
    preds = jnp.where(m > 0, r / jnp.where(m > 0, m, 1.0), r)
    lab = labels.astype(jnp.float32)
    numer = jnp.sum(preds * lab)
    denor = jnp.sum(preds ** p + lab ** p)
    return -(2.0 * numer + smooth) / (denor + smooth)


if __name__ == "__main__":
    key = jax.random.PRNGKey(0)
    k1, k2 = jax.random.split(key)

    # (N, C, H, W) like the PyTorch module
    N, C, H, W = 2, 4, 16, 16
    logits = jax.random.normal(k1, (N, C, H, W), dtype=jnp.float32)   # raw logits
    labels = jax.random.uniform(k2, (N, C, H, W), dtype=jnp.float32)  # soft labels in [0, 1)

    # p = 1 (module default)
    out = soft_dice_loss(logits, labels, p=1, smooth=1)
    out = jax.block_until_ready(out)
    ref = _reference_soft_dice(logits, labels, p=1, smooth=1)
    assert jnp.allclose(out, ref, rtol=1e-5, atol=1e-5), (out, ref)

    # p = 2 exercises the integer-power (VPU multiply) path
    out2 = jax.block_until_ready(soft_dice_loss(logits, labels, p=2, smooth=1))
    ref2 = _reference_soft_dice(logits, labels, p=2, smooth=1)
    assert jnp.allclose(out2, ref2, rtol=1e-5, atol=1e-5), (out2, ref2)

    # An awkward, non-lane-aligned shape exercises the ragged-tail path
    k3, k4 = jax.random.split(k2)
    logits3 = jax.random.normal(k3, (3, 5, 7, 11), dtype=jnp.float32)
    labels3 = jax.random.uniform(k4, (3, 5, 7, 11), dtype=jnp.float32)
    out3 = jax.block_until_ready(soft_dice_loss(logits3, labels3, p=1, smooth=1))
    ref3 = _reference_soft_dice(logits3, labels3, p=1, smooth=1)
    assert jnp.allclose(out3, ref3, rtol=1e-5, atol=1e-5), (out3, ref3)

    print("KERNEL_OK")
</pallas_src>

<mosaic_0001>
module attributes {stable_mosaic.version = 11 : i64} {
  func.func @_soft_dice_partials_kernel(%arg0: i32, %arg1: i32, %arg2: memref<16x128xf32, #tpu.memory_space<vmem>>, %arg3: memref<16x128xf32, #tpu.memory_space<vmem>>, %arg4: memref<8x128xf32, #tpu.memory_space<vmem>>, %arg5: memref<8x128xf32, #tpu.memory_space<vmem>>, %arg6: memref<8x128xf32, #tpu.memory_space<vmem>>, %arg7: memref<8x128xf32, #tpu.memory_space<vmem>>) attributes {dimension_semantics = [#tpu.dimension_semantics<arbitrary>, #tpu.dimension_semantics<arbitrary>], iteration_bounds = array<i64: 1, 1>, scalar_prefetch = 0 : i64, scratch_operands = 0 : i64, tpu.core_type = #tpu.core_type<tc>, window_params = [{transform_indices = @transform_0, window_bounds = array<i64: 16, 128>}, {transform_indices = @transform_1, window_bounds = array<i64: 16, 128>}, {transform_indices = @transform_2, window_bounds = array<i64: 8, 128>}, {transform_indices = @transform_3, window_bounds = array<i64: 8, 128>}, {transform_indices = @transform_4, window_bounds = array<i64: 8, 128>}, {transform_indices = @transform_5, window_bounds = array<i64: 8, 128>}]} {
    %c0_i32 = arith.constant 0 : i32
    %0 = arith.cmpi eq, %arg1, %c0_i32 : i32
    %1 = arith.extui %0 : i1 to i32
    %c0_i32_0 = arith.constant 0 : i32
    %2 = arith.cmpi ne, %1, %c0_i32_0 : i32
    scf.if %2 {
      %cst_24 = arith.constant 0.000000e+00 : f32
      %28 = vector.broadcast %cst_24 : f32 to vector<8x128xf32>
      %c0_25 = arith.constant 0 : index
      %c0_26 = arith.constant 0 : index
      %29 = vector.load %arg4[%c0_25, %c0_26] : memref<8x128xf32, #tpu.memory_space<vmem>>, vector<8x128xf32>
      tpu.vector_store %arg4[%c0_25, %c0_26], %28 {strides = array<i32>} : memref<8x128xf32, #tpu.memory_space<vmem>>, vector<8x128xf32>,
      %cst_27 = arith.constant 0.000000e+00 : f32
      %30 = vector.broadcast %cst_27 : f32 to vector<8x128xf32>
      %c0_28 = arith.constant 0 : index
      %c0_29 = arith.constant 0 : index
      %31 = vector.load %arg5[%c0_28, %c0_29] : memref<8x128xf32, #tpu.memory_space<vmem>>, vector<8x128xf32>
      tpu.vector_store %arg5[%c0_28, %c0_29], %30 {strides = array<i32>} : memref<8x128xf32, #tpu.memory_space<vmem>>, vector<8x128xf32>,
      %cst_30 = arith.constant 0.000000e+00 : f32
      %32 = vector.broadcast %cst_30 : f32 to vector<8x128xf32>
      %c0_31 = arith.constant 0 : index
      %c0_32 = arith.constant 0 : index
      %33 = vector.load %arg6[%c0_31, %c0_32] : memref<8x128xf32, #tpu.memory_space<vmem>>, vector<8x128xf32>
      tpu.vector_store %arg6[%c0_31, %c0_32], %32 {strides = array<i32>} : memref<8x128xf32, #tpu.memory_space<vmem>>, vector<8x128xf32>,
      %cst_33 = arith.constant 0.000000e+00 : f32
      %34 = vector.broadcast %cst_33 : f32 to vector<8x128xf32>
      %c0_34 = arith.constant 0 : index
      %c0_35 = arith.constant 0 : index
      %35 = vector.load %arg7[%c0_34, %c0_35] : memref<8x128xf32, #tpu.memory_space<vmem>>, vector<8x128xf32>
      tpu.vector_store %arg7[%c0_34, %c0_35], %34 {strides = array<i32>} : memref<8x128xf32, #tpu.memory_space<vmem>>, vector<8x128xf32>,
    } else {
    }
    %c0 = arith.constant 0 : index
    %c0_1 = arith.constant 0 : index
    %3 = vector.load %arg2[%c0, %c0_1] : memref<16x128xf32, #tpu.memory_space<vmem>>, vector<16x128xf32>
    %c0_2 = arith.constant 0 : index
    %c0_3 = arith.constant 0 : index
    %4 = vector.load %arg3[%c0_2, %c0_3] : memref<16x128xf32, #tpu.memory_space<vmem>>, vector<16x128xf32>
    %cst = arith.constant 0.000000e+00 : f32
    %5 = vector.broadcast %cst : f32 to vector<16x128xf32>
    %6 = arith.maximumf %3, %5 : vector<16x128xf32>
    %c0_4 = arith.constant 0 : index
    %c0_5 = arith.constant 0 : index
    %7 = vector.load %arg4[%c0_4, %c0_5] : memref<8x128xf32, #tpu.memory_space<vmem>>, vector<8x128xf32>
    %8 = vector.shape_cast %6 : vector<16x128xf32> to vector<2x8x128xf32>
    %cst_6 = arith.constant dense<0xFF800000> : vector<8x128xf32>
    %9 = vector.multi_reduction <maximumf>, %8, %cst_6 [0] : vector<2x8x128xf32> to vector<8x128xf32>
    %10 = arith.maximumf %7, %9 : vector<8x128xf32>
    %c0_7 = arith.constant 0 : index
    %c0_8 = arith.constant 0 : index
    %11 = vector.load %arg4[%c0_7, %c0_8] : memref<8x128xf32, #tpu.memory_space<vmem>>, vector<8x128xf32>
    tpu.vector_store %arg4[%c0_7, %c0_8], %10 {strides = array<i32>} : memref<8x128xf32, #tpu.memory_space<vmem>>, vector<8x128xf32>,
    %c0_9 = arith.constant 0 : index
    %c0_10 = arith.constant 0 : index
    %12 = vector.load %arg5[%c0_9, %c0_10] : memref<8x128xf32, #tpu.memory_space<vmem>>, vector<8x128xf32>
    %13 = arith.mulf %6, %4 : vector<16x128xf32>
    %14 = vector.shape_cast %13 : vector<16x128xf32> to vector<2x8x128xf32>
    %cst_11 = arith.constant dense<0.000000e+00> : vector<8x128xf32>
    %15 = vector.multi_reduction <add>, %14, %cst_11 [0] : vector<2x8x128xf32> to vector<8x128xf32>
    %16 = arith.addf %12, %15 : vector<8x128xf32>
    %c0_12 = arith.constant 0 : index
    %c0_13 = arith.constant 0 : index
    %17 = vector.load %arg5[%c0_12, %c0_13] : memref<8x128xf32, #tpu.memory_space<vmem>>, vector<8x128xf32>
    tpu.vector_store %arg5[%c0_12, %c0_13], %16 {strides = array<i32>} : memref<8x128xf32, #tpu.memory_space<vmem>>, vector<8x128xf32>,
    %c0_14 = arith.constant 0 : index
    %c0_15 = arith.constant 0 : index
    %18 = vector.load %arg6[%c0_14, %c0_15] : memref<8x128xf32, #tpu.memory_space<vmem>>, vector<8x128xf32>
    %19 = vector.shape_cast %6 : vector<16x128xf32> to vector<2x8x128xf32>
    %cst_16 = arith.constant dense<0.000000e+00> : vector<8x128xf32>
    %20 = vector.multi_reduction <add>, %19, %cst_16 [0] : vector<2x8x128xf32> to vector<8x128xf32>
    %21 = arith.addf %18, %20 : vector<8x128xf32>
    %c0_17 = arith.constant 0 : index
    %c0_18 = arith.constant 0 : index
    %22 = vector.load %arg6[%c0_17, %c0_18] : memref<8x128xf32, #tpu.memory_space<vmem>>, vector<8x128xf32>
    tpu.vector_store %arg6[%c0_17, %c0_18], %21 {strides = array<i32>} : memref<8x128xf32, #tpu.memory_space<vmem>>, vector<8x128xf32>,
    %c0_19 = arith.constant 0 : index
    %c0_20 = arith.constant 0 : index
    %23 = vector.load %arg7[%c0_19, %c0_20] : memref<8x128xf32, #tpu.memory_space<vmem>>, vector<8x128xf32>
    %24 = vector.shape_cast %4 : vector<16x128xf32> to vector<2x8x128xf32>
    %cst_21 = arith.constant dense<0.000000e+00> : vector<8x128xf32>
    %25 = vector.multi_reduction <add>, %24, %cst_21 [0] : vector<2x8x128xf32> to vector<8x128xf32>
    %26 = arith.addf %23, %25 : vector<8x128xf32>
    %c0_22 = arith.constant 0 : index
    %c0_23 = arith.constant 0 : index
    %27 = vector.load %arg7[%c0_22, %c0_23] : memref<8x128xf32, #tpu.memory_space<vmem>>, vector<8x128xf32>
    tpu.vector_store %arg7[%c0_22, %c0_23], %26 {strides = array<i32>} : memref<8x128xf32, #tpu.memory_space<vmem>>, vector<8x128xf32>,
    return
  }
  func.func @transform_0(%arg0: i32, %arg1: i32) -> (i32, i32) {
    %c1_i32 = arith.constant 1 : i32
    %0 = arith.muli %arg0, %c1_i32 : i32
    %1 = arith.addi %0, %arg1 : i32
    %c0_i32 = arith.constant 0 : i32
    %c0_i32_0 = arith.constant 0 : i32
    return %1, %c0_i32 : i32, i32
  }
  func.func @transform_1(%arg0: i32, %arg1: i32) -> (i32, i32) {
    %c1_i32 = arith.constant 1 : i32
    %0 = arith.muli %arg0, %c1_i32 : i32
    %1 = arith.addi %0, %arg1 : i32
    %c0_i32 = arith.constant 0 : i32
    %c0_i32_0 = arith.constant 0 : i32
    return %1, %c0_i32 : i32, i32
  }
  func.func @transform_2(%arg0: i32, %arg1: i32) -> (i32, i32) {
    %c0_i32 = arith.constant 0 : i32
    %c0_i32_0 = arith.constant 0 : i32
    return %arg0, %c0_i32 : i32, i32
  }
  func.func @transform_3(%arg0: i32, %arg1: i32) -> (i32, i32) {
    %c0_i32 = arith.constant 0 : i32
    %c0_i32_0 = arith.constant 0 : i32
    return %arg0, %c0_i32 : i32, i32
  }
  func.func @transform_4(%arg0: i32, %arg1: i32) -> (i32, i32) {
    %c0_i32 = arith.constant 0 : i32
    %c0_i32_0 = arith.constant 0 : i32
    return %arg0, %c0_i32 : i32, i32
  }
  func.func @transform_5(%arg0: i32, %arg1: i32) -> (i32, i32) {
    %c0_i32 = arith.constant 0 : i32
    %c0_i32_0 = arith.constant 0 : i32
    return %arg0, %c0_i32 : i32, i32
  }
}

</mosaic_0001>

<bundles_post_ra>
// kernel: tpu_custom_call.1
= control target key start
LH: loop header
LB: loop body
LE: loop exit
PB: predicated region body
PF: predicated region fallthrough
CT: control target
= control target key end

     0   :  { %11 = vsyncpa [#allocation3], 0  ;;  %s349_s0 = inlined_call_operand.hbm [shape: f32[16,128], index: 0, kind: input, shape index: {}]   ;;  %s350_s1 = inlined_call_operand.hbm [shape: f32[16,128], index: 1, kind: input, shape index: {}]   ;;  %s351_s2 = inlined_call_operand.hbm [shape: f32[8,128], index: 2, kind: output, shape index: {0}]   ;;  %s352_s3 = inlined_call_operand.hbm [shape: f32[8,128], index: 3, kind: output, shape index: {1}]   ;;  %s353_s4 = inlined_call_operand.hbm [shape: f32[8,128], index: 4, kind: output, shape index: {2}]   ;;  %s354_s5 = inlined_call_operand.hbm [shape: f32[8,128], index: 5, kind: output, shape index: {3}]  }
   0x1   :  { %12 = vsyncpa [#allocation6], 0 }
   0x2   :  { %13 = vsyncpa [#allocation4], 0 }
   0x3   :  { %14 = vsyncpa [#allocation9], 0 }
   0x4   :  { %15 = vsyncpa [#allocation12], 0  ;;  %s286_s18 = smov [#allocation2]  }
   0x5   :  { %s25_s19 = sshll.u32 %s286_s18, 4  ;;  %s26_s19 = int_to_ptr.vmem [resolvable:$true] %s25_s19 }
   0x6   :  { %s164_s20 = scalar_lea.vmem %s26_s19, 256  ;;  %p169_p1 = scmp.lt.s32.totalorder %s26_s19, %s26_s19 }
   0x7   :  { %p165_p0 = scmp.ne.s32.totalorder %s26_s19, %s164_s20  ;;  %p170_p2 = scmp.lt.s32.totalorder %s164_s20, %s164_s20 }
   0x9   :  { %p171_p3 = por %p170_p2, %p169_p1 }
   0xb   :  { %p172_p4 = pnand %p171_p3, %p165_p0 }
   0xd   :  { %175 = shalt.err (!%p172_p4)
}
   0xe   :  { %s287_s21 = smov 128   ;;  %s288_s22 = smov 8  }
   0xf   :  { %31 = dma.hbm_to_vmem [thread:$0]  %s349_s0, 256, %s26_s19, [#allocation3], %s287_s21, %s287_s21, %s288_s22  }
  0x10   :  { %s289_s25 = smov [#allocation5]  }
  0x11   :  { %s41_s26 = sshll.u32 %s289_s25, 4  ;;  %s42_s26 = int_to_ptr.vmem [resolvable:$true] %s41_s26 }
  0x12   :  { %s184_s27 = scalar_lea.vmem %s42_s26, 256  ;;  %p189_p6 = scmp.lt.s32.totalorder %s42_s26, %s42_s26 }
  0x13   :  { %p185_p5 = scmp.ne.s32.totalorder %s42_s26, %s184_s27  ;;  %p190_p7 = scmp.lt.s32.totalorder %s184_s27, %s184_s27 }
  0x15   :  { %p191_p8 = por %p190_p7, %p189_p6 }
  0x17   :  { %p192_p9 = pnand %p191_p8, %p185_p5 }
  0x19   :  { %195 = shalt.err (!%p192_p9)
}
  0x1a   :  { %47 = dma.hbm_to_vmem [thread:$0]  %s350_s1, 256, %s42_s26, [#allocation6], %s287_s21, %s287_s21, %s288_s22  }
  0x1b   :  { %276 = dma.done.wait [#allocation3], 256  }
  0x1c   :  { %277 = vsyncadd [#allocation3], 4294967040 }
  0x1d   :  { %278 = dma.done.wait [#allocation6], 256  }
  0x1e   :  { %279 = vsyncadd [#allocation6], 4294967040  ;;  %v66_v0 = vld [vmem:[#allocation2] sm:$0xff]  ;;  %v67_v1 = vld [vmem:[#allocation2 + $0x8] sm:$0xff]  ;;  %s290_s0 = smov [#allocation11]   ;;  %s291_s6 = smov [#allocation7]  }
  0x1f   :  { %v68_v2 = vld [vmem:[#allocation5] sm:$0xff]  ;;  %v69_v3 = vld [vmem:[#allocation5 + $0x8] sm:$0xff]  ;;  %v70_v4 = vmax.f32 %v66_v0, 0.0  ;;  %v71_v5 = vmax.f32 %v67_v1, 0.0  ;;  %s126_s30 = sshll.u32 %s290_s0, 4  ;;  %s96_s7 = sshll.u32 %s291_s6, 4  ;;  %s127_s30 = int_to_ptr.vmem [resolvable:$true] %s126_s30  ;;  %s97_s7 = int_to_ptr.vmem [resolvable:$true] %s96_s7 }
  0x20   :  { %v87_v6 = vadd.f32 %v69_v3, %v68_v2  ;;  %s292_s1 = smov [#allocation8]   ;;  %s293_s9 = smov [#allocation10]  }
  0x21   :  { %v77_v7 = vmul.f32 %v70_v4, %v68_v2  ;;  %v78_v8 = vmul.f32 %v71_v5, %v69_v3  ;;  %v73_v9 = vmax.f32 %v70_v4, %v71_v5  ;;  %v83_v10 = vadd.f32 %v71_v5, %v70_v4  ;;  %s106_s8 = sshll.u32 %s292_s1, 4  ;;  %s116_s10 = sshll.u32 %s293_s9, 4  ;;  %s107_s8 = int_to_ptr.vmem [resolvable:$true] %s106_s8  ;;  %s330_s10 = int_to_ptr.vmem [resolvable:$true] %s116_s10 }
  0x22   :  { %89 = vst [vmem:[#allocation11] sm:$0xff] %v87_v6  ;;  %s196_s11 = scalar_lea.vmem %s127_s30, 128  ;;  %p201_p11 = scmp.lt.s32.totalorder %s127_s30, %s127_s30 }
  0x23   :  { %v79_v11 = vadd.f32 %v78_v8, %v77_v7  ;;  %v74_v12 = vmax.f32 %v73_v9, 0.0  ;;  %85 = vst [vmem:[#allocation10] sm:$0xff] %v83_v10  ;;  %p197_p10 = scmp.ne.s32.totalorder %s127_s30, %s196_s11  ;;  %p202_p12 = scmp.lt.s32.totalorder %s196_s11, %s196_s11 }
  0x25   :  { %75 = vst [vmem:[#allocation7] sm:$0xff] %v74_v12  ;;  %p203_p13 = por %p202_p12, %p201_p11 }
  0x27   :  { %p204_p0 = pnand %p203_p13, %p197_p10 }
  0x29   :  { %207 = shalt.err (!%p204_p0)
}
  0x2a   :  { %129 = dma.vmem_to_hbm [thread:$0]  %s127_s30, 128, %s354_s5, [#allocation12]  }
  0x2b   :  { %s216_s14 = scalar_lea.vmem %s97_s7, 128  ;;  %p221_p2 = scmp.lt.s32.totalorder %s97_s7, %s97_s7 }
  0x2c   :  { %p217_p1 = scmp.ne.s32.totalorder %s97_s7, %s216_s14  ;;  %p222_p3 = scmp.lt.s32.totalorder %s216_s14, %s216_s14 }
  0x2e   :  { %p223_p4 = por %p222_p3, %p221_p2 }
  0x30   :  { %p224_p5 = pnand %p223_p4, %p217_p1 }
  0x32   :  { %227 = shalt.err (!%p224_p5)
}
  0x33   :  { %99 = dma.vmem_to_hbm [thread:$0]  %s97_s7, 128, %s351_s2, [#allocation4]   ;;  %81 = vst [vmem:[#allocation8] sm:$0xff] %v79_v11 }
  0x34   :  { %s236_s17 = scalar_lea.vmem %s107_s8, 128  ;;  %p241_p7 = scmp.lt.s32.totalorder %s107_s8, %s107_s8 }
  0x35   :  { %p237_p6 = scmp.ne.s32.totalorder %s107_s8, %s236_s17  ;;  %p242_p8 = scmp.lt.s32.totalorder %s236_s17, %s236_s17 }
  0x37   :  { %p243_p9 = por %p242_p8, %p241_p7 }
  0x39   :  { %p244_p10 = pnand %p243_p9, %p237_p6 }
  0x3b   :  { %247 = shalt.err (!%p244_p10)
}
  0x3c   :  { %109 = dma.vmem_to_hbm [thread:$0]  %s107_s8, 128, %s352_s3, [#allocation9]  }
  0x3d   :  { %s256_s19 = scalar_lea.vmem %s330_s10, 128  ;;  %p261_p12 = scmp.lt.s32.totalorder %s330_s10, %s330_s10 }
  0x3e   :  { %p257_p11 = scmp.ne.s32.totalorder %s330_s10, %s256_s19  ;;  %p262_p13 = scmp.lt.s32.totalorder %s256_s19, %s256_s19 }
  0x40   :  { %p263_p0 = por %p262_p13, %p261_p12 }
  0x42   :  { %p264_p1 = pnand %p263_p0, %p257_p11 }
  0x44   :  { %267 = shalt.err (!%p264_p1)
}
  0x45   :  { %119 = dma.vmem_to_hbm [thread:$0]  %s330_s10, 128, %s353_s4, [#allocation9]  }
  0x46   :  { %280 = dma.done.wait [#allocation4], 128  }
  0x47   :  { %281 = vsyncadd [#allocation4], 4294967168 }
  0x48   :  { %282 = dma.done.wait [#allocation9], 256  }
  0x49   :  { %283 = vsyncadd [#allocation9], 4294967040 }
  0x4a   :  { %284 = dma.done.wait [#allocation12], 128  }
  0x4b   :  { %285 = vsyncadd [#allocation12], 4294967168 }
  0x4c   :  { %142 = vsyncpa [#allocation3], 1 }
  0x4d   :  { %143 = vsyncpa [#allocation6], 1 }
  0x4e   :  { %144 = vsyncpa [#allocation4], 1 }
  0x4f   :  { %145 = vsyncpa [#allocation9], 1 }
  0x50   :  { %146 = vsyncpa [#allocation12], 1 }

</bundles_post_ra>
